<compile_context>
chip_gen: v6e
topology: v6e:2x2x1
jax: 0.10.0
libtpu: 0.0.40
codegen_flags: <defaults>
</compile_context>

<pallas_src>
import math
import functools

import jax
import jax.numpy as jnp
from jax import lax
from jax.experimental import pallas as pl
from jax.experimental.pallas import tpu as pltpu

# ----------------------------- configuration -------------------------------
D_MODEL = 32
NHEAD = 4
DIM_FF = 64
SEQ = 8
BATCH = 2
EPS = 1e-5

# Set True on v6e/v7x if a looser (~2e-2) tolerance vs. the f32 reference is
# acceptable; keeps all softmax / LayerNorm math in f32 either way.
USE_BF16_DOTS = False


def _mx(a):
    """Cast a matmul operand to bf16 at the dot boundary (optional)."""
    return a.astype(jnp.bfloat16) if USE_BF16_DOTS else a


# ------------------------------- kernel ------------------------------------
def _encoder_kernel(nhead, eps, B, S, E, dff,
                    x_ref, w_ref, vec_ref,
                    out_ref, attn_ref,
                    ctx_ref):
    BS = B * S
    hd = E // nhead

    x = x_ref[...]                                        # (B*S, E) f32, b-major rows

    # ---- static slices of the packed slabs (cheap, done once) -------------
    wqkv = w_ref[0:E, 0:3 * E]                            # (E, 3E)  q-cols pre-scaled
    w1   = w_ref[E:2 * E, 0:dff]                          # (E, dff)
    wo   = w_ref[2 * E:3 * E, 0:E]                        # (E, E)
    w2   = w_ref[3 * E:3 * E + dff, 0:E]                  # (dff, E)

    bqkv = vec_ref[0:1, 0:3 * E]                          # q-part pre-scaled
    bo   = vec_ref[1:2, 0:E]
    b1   = vec_ref[2:3, 0:dff]
    b2   = vec_ref[3:4, 0:E]
    g1   = vec_ref[4:5, 0:E]
    be1  = vec_ref[5:6, 0:E]
    g2   = vec_ref[6:7, 0:E]
    be2  = vec_ref[7:8, 0:E]

    # ---- fused Q/K/V projection: ONE MXU pass + ONE bias add ---------------
    qkv = jnp.dot(_mx(x), _mx(wqkv), preferred_element_type=jnp.float32) + bqkv
    q3 = qkv[:, 0:E].reshape(B, S, E)
    k3 = qkv[:, E:2 * E].reshape(B, S, E)
    v3 = qkv[:, 2 * E:3 * E].reshape(B, S, E)

    # ---- attention: static head loop; per-head context written into a
    #      (B*S, E) VMEM scratch at its lane offset ---------------------------
    attn_sum = jnp.zeros((B, S, S), jnp.float32)
    for h in range(nhead):                                 # static, nhead=4
        lo = h * hd
        qh = q3[:, :, lo:lo + hd]                          # (B, S, hd)
        kh = k3[:, :, lo:lo + hd]
        vh = v3[:, :, lo:lo + hd]
        s = jnp.einsum('bqd,bkd->bqk', _mx(qh), _mx(kh),
                       preferred_element_type=jnp.float32)  # (B, S, S)
        s = s - jnp.max(s, axis=-1, keepdims=True)
        p = jnp.exp(s)
        p = p / jnp.sum(p, axis=-1, keepdims=True)          # exact divide (tolerance headroom)
        attn_sum = attn_sum + p
        ctx = jnp.einsum('bqk,bkd->bqd', _mx(p), _mx(vh),
                         preferred_element_type=jnp.float32)  # (B, S, hd)
        ctx_ref[:, lo:lo + hd] = ctx.reshape(BS, hd)

    # head average (average_attn_weights=True): constant multiply, no divide.
    attn_ref[...] = (attn_sum * (1.0 / nhead)).astype(attn_ref.dtype)

    # ---- single out-projection matmul (K = E), replaces nhead K=hd accumulates
    attn_out = jnp.dot(_mx(ctx_ref[...]), _mx(wo),
                       preferred_element_type=jnp.float32) + bo

    # ---- residual + LayerNorm 1 ---------------------------------------------
    h1 = x + attn_out
    mu1 = jnp.mean(h1, axis=-1, keepdims=True)
    var1 = jnp.mean((h1 - mu1) ** 2, axis=-1, keepdims=True)
    n1 = (h1 - mu1) * lax.rsqrt(var1 + eps) * g1 + be1

    # ---- feed-forward: linear1 -> ReLU -> linear2 ----------------------------
    f = jnp.maximum(
        jnp.dot(_mx(n1), _mx(w1), preferred_element_type=jnp.float32) + b1, 0.0)
    f2 = jnp.dot(_mx(f), _mx(w2), preferred_element_type=jnp.float32) + b2

    # ---- residual + LayerNorm 2 ---------------------------------------------
    h2 = n1 + f2
    mu2 = jnp.mean(h2, axis=-1, keepdims=True)
    var2 = jnp.mean((h2 - mu2) ** 2, axis=-1, keepdims=True)
    n2 = (h2 - mu2) * lax.rsqrt(var2 + eps) * g2 + be2

    out_ref[...] = n2.astype(out_ref.dtype)


# -------------------------- host-side parameter packing ---------------------
def pack_params(params, *, nhead=NHEAD):
    """Pack the 12 PyTorch-layout parameters into two slabs (done once)."""
    (wqkv, bqkv, wo, bo, w1, b1, w2, b2, g1, be1, g2, be2) = params
    E = wo.shape[0]
    dff = w1.shape[0]
    hd = E // nhead
    scale = 1.0 / math.sqrt(hd)
    width = max(3 * E, dff)

    wq_t = wqkv[:E].T * scale                     # scale folded into q columns
    wk_t = wqkv[E:2 * E].T
    wv_t = wqkv[2 * E:].T
    wqkv_t = jnp.concatenate([wq_t, wk_t, wv_t], axis=1)      # (E, 3E)

    def padw(m):
        return jnp.pad(m, ((0, 0), (0, width - m.shape[1])))

    # rows: [0:E] wqkv_t | [E:2E] w1_t | [2E:3E] wo_t | [3E:3E+dff] w2_t
    w_slab = jnp.concatenate(
        [padw(wqkv_t), padw(w1.T), padw(wo.T), padw(w2.T)], axis=0)  # (3E+dff, width)

    bqkv_s = jnp.concatenate([bqkv[:E] * scale, bqkv[E:]])           # (3E,)

    def padv(v):
        return jnp.pad(v, (0, width - v.shape[0]))

    vec_slab = jnp.stack(
        [padv(bqkv_s), padv(bo), padv(b1), padv(b2),
         padv(g1), padv(be1), padv(g2), padv(be2)], axis=0)          # (8, width)

    return w_slab, vec_slab


# ------------------------------ wrapper -------------------------------------
def transformer_encode(src, w_slab, vec_slab, *, nhead=NHEAD, eps=EPS):
    """src: (S, B, E) float32 (batch_first=False).
    Returns (src_out (S, B, E), attn (B, S, S))."""
    S, B, E = src.shape
    dff = w_slab.shape[0] - 3 * E

    x2 = jnp.transpose(src, (1, 0, 2)).reshape(B * S, E)     # flatten batch*seq

    kernel = functools.partial(_encoder_kernel, nhead, eps, B, S, E, dff)

    vmem = pl.BlockSpec(memory_space=pltpu.MemorySpace.VMEM)
    out2, attn = pl.pallas_call(
        kernel,
        out_shape=(jax.ShapeDtypeStruct((B * S, E), src.dtype),
                   jax.ShapeDtypeStruct((B, S, S), src.dtype)),
        in_specs=[vmem, vmem, vmem],
        out_specs=(vmem, vmem),
        scratch_shapes=[pltpu.VMEM((B * S, E), jnp.float32)],
    )(x2, w_slab, vec_slab)

    out = jnp.transpose(out2.reshape(B, S, E), (1, 0, 2))    # back to (S, B, E)
    return out, attn


# ---------------------- pure-JAX reference (for checking) -------------------
def transformer_encode_ref(src, params, *, nhead=NHEAD, eps=EPS):
    (wqkv, bqkv, wo, bo, w1, b1, w2, b2, g1, be1, g2, be2) = params
    S, B, E = src.shape
    hd = E // nhead
    x = jnp.transpose(src, (1, 0, 2))                        # (B, S, E)
    qkv = jnp.einsum('bse,fe->bsf', x, wqkv) + bqkv          # (B, S, 3E)
    q, k, v = qkv[..., :E], qkv[..., E:2 * E], qkv[..., 2 * E:]
    q = q.reshape(B, S, nhead, hd).transpose(0, 2, 1, 3) / math.sqrt(hd)
    k = k.reshape(B, S, nhead, hd).transpose(0, 2, 1, 3)
    v = v.reshape(B, S, nhead, hd).transpose(0, 2, 1, 3)
    s = jnp.einsum('bhqd,bhkd->bhqk', q, k)
    p = jax.nn.softmax(s, axis=-1)
    ctx = jnp.einsum('bhqk,bhkd->bhqd', p, v).transpose(0, 2, 1, 3).reshape(B, S, E)
    attn = jnp.mean(p, axis=1)                               # (B, S, S)
    attn_out = jnp.einsum('bse,fe->bsf', ctx, wo) + bo

    def ln(h, g, be):
        mu = jnp.mean(h, axis=-1, keepdims=True)
        var = jnp.mean((h - mu) ** 2, axis=-1, keepdims=True)
        return (h - mu) / jnp.sqrt(var + eps) * g + be

    n1 = ln(x + attn_out, g1, be1)
    f = jax.nn.relu(jnp.einsum('bse,fe->bsf', n1, w1) + b1)
    f2 = jnp.einsum('bsf,ef->bse', f, w2) + b2
    n2 = ln(n1 + f2, g2, be2)
    return jnp.transpose(n2, (1, 0, 2)), attn


# ------------------------------- main ---------------------------------------
if __name__ == "__main__":
    key = jax.random.PRNGKey(0)
    keys = jax.random.split(key, 16)

    E, dff = D_MODEL, DIM_FF
    # deterministic synthetic parameters (shapes match nn.TransformerEncoderLayer)
    wqkv = jax.random.normal(keys[0], (3 * E, E), jnp.float32) * (1.0 / math.sqrt(E))
    bqkv = jax.random.normal(keys[1], (3 * E,), jnp.float32) * 0.02
    wo = jax.random.normal(keys[2], (E, E), jnp.float32) * (1.0 / math.sqrt(E))
    bo = jax.random.normal(keys[3], (E,), jnp.float32) * 0.02
    w1 = jax.random.normal(keys[4], (dff, E), jnp.float32) * (1.0 / math.sqrt(E))
    b1 = jax.random.normal(keys[5], (dff,), jnp.float32) * 0.02
    w2 = jax.random.normal(keys[6], (E, dff), jnp.float32) * (1.0 / math.sqrt(dff))
    b2 = jax.random.normal(keys[7], (E,), jnp.float32) * 0.02
    g1 = jnp.ones((E,), jnp.float32) + 0.1 * jax.random.normal(keys[8], (E,), jnp.float32)
    be1 = 0.02 * jax.random.normal(keys[9], (E,), jnp.float32)
    g2 = jnp.ones((E,), jnp.float32) + 0.1 * jax.random.normal(keys[10], (E,), jnp.float32)
    be2 = 0.02 * jax.random.normal(keys[11], (E,), jnp.float32)
    params = (wqkv, bqkv, wo, bo, w1, b1, w2, b2, g1, be1, g2, be2)

    src = jax.random.normal(keys[12], (SEQ, BATCH, E), jnp.float32)

    # host-side packing (done once per set of weights)
    w_slab, vec_slab = pack_params(params, nhead=NHEAD)

    out, attn = transformer_encode(src, w_slab, vec_slab)
    out = jax.block_until_ready(out)
    attn = jax.block_until_ready(attn)

    out_ref, attn_ref = transformer_encode_ref(src, params)
    assert out.shape == (SEQ, BATCH, E) and attn.shape == (BATCH, SEQ, SEQ)
    assert jnp.allclose(out, out_ref, atol=2e-3, rtol=2e-3), "output mismatch vs reference"
    assert jnp.allclose(attn, attn_ref, atol=2e-3, rtol=2e-3), "attn mismatch vs reference"

    print("KERNEL_OK")
</pallas_src>

<mosaic_0001>
module attributes {stable_mosaic.version = 11 : i64} {
  func.func @_encoder_kernel(%arg0: memref<16x32xf32, #tpu.memory_space<vmem>>, %arg1: memref<160x96xf32, #tpu.memory_space<vmem>>, %arg2: memref<8x96xf32, #tpu.memory_space<vmem>>, %arg3: memref<16x32xf32, #tpu.memory_space<vmem>>, %arg4: memref<2x8x8xf32, #tpu.memory_space<vmem>>, %arg5: memref<16x32xf32, #tpu.memory_space<vmem>>) attributes {dimension_semantics = [], scalar_prefetch = 0 : i64, scratch_operands = 1 : i64, tpu.core_type = #tpu.core_type<tc>} {
    %c0 = arith.constant 0 : index
    %c0_0 = arith.constant 0 : index
    %0 = vector.load %arg0[%c0, %c0_0] : memref<16x32xf32, #tpu.memory_space<vmem>>, vector<16x32xf32>
    %c0_1 = arith.constant 0 : index
    %c0_2 = arith.constant 0 : index
    %1 = vector.load %arg1[%c0_1, %c0_2] : memref<160x96xf32, #tpu.memory_space<vmem>>, vector<32x96xf32>
    %c32 = arith.constant 32 : index
    %c0_3 = arith.constant 0 : index
    %2 = vector.load %arg1[%c32, %c0_3] : memref<160x96xf32, #tpu.memory_space<vmem>>, vector<32x64xf32>
    %c64 = arith.constant 64 : index
    %c0_4 = arith.constant 0 : index
    %3 = vector.load %arg1[%c64, %c0_4] : memref<160x96xf32, #tpu.memory_space<vmem>>, vector<32x32xf32>
    %c96 = arith.constant 96 : index
    %c0_5 = arith.constant 0 : index
    %4 = vector.load %arg1[%c96, %c0_5] : memref<160x96xf32, #tpu.memory_space<vmem>>, vector<64x32xf32>
    %c0_6 = arith.constant 0 : index
    %c0_7 = arith.constant 0 : index
    %5 = vector.load %arg2[%c0_6, %c0_7] : memref<8x96xf32, #tpu.memory_space<vmem>>, vector<1x96xf32>
    %c1 = arith.constant 1 : index
    %c0_8 = arith.constant 0 : index
    %6 = vector.load %arg2[%c1, %c0_8] : memref<8x96xf32, #tpu.memory_space<vmem>>, vector<1x32xf32>
    %c2 = arith.constant 2 : index
    %c0_9 = arith.constant 0 : index
    %7 = vector.load %arg2[%c2, %c0_9] : memref<8x96xf32, #tpu.memory_space<vmem>>, vector<1x64xf32>
    %c3 = arith.constant 3 : index
    %c0_10 = arith.constant 0 : index
    %8 = vector.load %arg2[%c3, %c0_10] : memref<8x96xf32, #tpu.memory_space<vmem>>, vector<1x32xf32>
    %c4 = arith.constant 4 : index
    %c0_11 = arith.constant 0 : index
    %9 = vector.load %arg2[%c4, %c0_11] : memref<8x96xf32, #tpu.memory_space<vmem>>, vector<1x32xf32>
    %c5 = arith.constant 5 : index
    %c0_12 = arith.constant 0 : index
    %10 = vector.load %arg2[%c5, %c0_12] : memref<8x96xf32, #tpu.memory_space<vmem>>, vector<1x32xf32>
    %c6 = arith.constant 6 : index
    %c0_13 = arith.constant 0 : index
    %11 = vector.load %arg2[%c6, %c0_13] : memref<8x96xf32, #tpu.memory_space<vmem>>, vector<1x32xf32>
    %c7 = arith.constant 7 : index
    %c0_14 = arith.constant 0 : index
    %12 = vector.load %arg2[%c7, %c0_14] : memref<8x96xf32, #tpu.memory_space<vmem>>, vector<1x32xf32>
    %cst = arith.constant dense<0.000000e+00> : vector<16x96xf32>
    %13 = tpu.matmul %0, %1, %cst {dimension_numbers = #tpu.dot_dimension_numbers<[1], [0], [0], [1], [0, 0, 1, 1], [], []>} : vector<16x32xf32>, vector<32x96xf32>, vector<16x96xf32> -> vector<16x96xf32>
    %14 = vector.broadcast %5 : vector<1x96xf32> to vector<16x96xf32>
    %15 = arith.addf %13, %14 : vector<16x96xf32>
    %16 = vector.extract_strided_slice %15 {offsets = [0, 0], sizes = [16, 32], strides = [1, 1]} : vector<16x96xf32> to vector<16x32xf32>
    %17 = vector.shape_cast %16 : vector<16x32xf32> to vector<2x8x32xf32>
    %18 = vector.extract_strided_slice %15 {offsets = [0, 32], sizes = [16, 32], strides = [1, 1]} : vector<16x96xf32> to vector<16x32xf32>
    %19 = vector.shape_cast %18 : vector<16x32xf32> to vector<2x8x32xf32>
    %20 = vector.extract_strided_slice %15 {offsets = [0, 64], sizes = [16, 32], strides = [1, 1]} : vector<16x96xf32> to vector<16x32xf32>
    %21 = vector.shape_cast %20 : vector<16x32xf32> to vector<2x8x32xf32>
    %cst_15 = arith.constant 0.000000e+00 : f32
    %22 = vector.broadcast %cst_15 : f32 to vector<2x8x8xf32>
    %23 = vector.extract_strided_slice %17 {offsets = [0, 0, 0], sizes = [2, 8, 8], strides = [1, 1, 1]} : vector<2x8x32xf32> to vector<2x8x8xf32>
    %24 = vector.extract_strided_slice %19 {offsets = [0, 0, 0], sizes = [2, 8, 8], strides = [1, 1, 1]} : vector<2x8x32xf32> to vector<2x8x8xf32>
    %25 = vector.extract_strided_slice %21 {offsets = [0, 0, 0], sizes = [2, 8, 8], strides = [1, 1, 1]} : vector<2x8x32xf32> to vector<2x8x8xf32>
    "tpu.trace_start"() <{level = 10 : i32, message = "bqd,bkd->bqk"}> : () -> ()
    %cst_16 = arith.constant dense<0.000000e+00> : vector<2x8x8xf32>
    %26 = tpu.matmul %23, %24, %cst_16 {dimension_numbers = #tpu.dot_dimension_numbers<[2], [2], [1], [1], [0, 0, 0, 1, 1, 1], [0], [0]>} : vector<2x8x8xf32>, vector<2x8x8xf32>, vector<2x8x8xf32> -> vector<2x8x8xf32>
    "tpu.trace_stop"() : () -> ()
    %cst_17 = arith.constant dense<0xFF800000> : vector<2x8xf32>
    %27 = vector.multi_reduction <maximumf>, %26, %cst_17 [2] : vector<2x8x8xf32> to vector<2x8xf32>
    %28 = vector.shape_cast %27 : vector<2x8xf32> to vector<2x8x1xf32>
    %29 = vector.broadcast %28 : vector<2x8x1xf32> to vector<2x8x8xf32>
    %30 = arith.subf %26, %29 : vector<2x8x8xf32>
    %31 = math.exp %30 : vector<2x8x8xf32>
    %cst_18 = arith.constant dense<0.000000e+00> : vector<2x8xf32>
    %32 = vector.multi_reduction <add>, %31, %cst_18 [2] : vector<2x8x8xf32> to vector<2x8xf32>
    %33 = vector.shape_cast %32 : vector<2x8xf32> to vector<2x8x1xf32>
    %34 = vector.broadcast %33 : vector<2x8x1xf32> to vector<2x8x8xf32>
    %35 = arith.divf %31, %34 : vector<2x8x8xf32>
    %36 = arith.addf %22, %35 : vector<2x8x8xf32>
    "tpu.trace_start"() <{level = 10 : i32, message = "bqk,bkd->bqd"}> : () -> ()
    %cst_19 = arith.constant dense<0.000000e+00> : vector<2x8x8xf32>
    %37 = tpu.matmul %35, %25, %cst_19 {dimension_numbers = #tpu.dot_dimension_numbers<[2], [1], [1], [2], [0, 0, 0, 1, 1, 2], [0], [0]>} : vector<2x8x8xf32>, vector<2x8x8xf32>, vector<2x8x8xf32> -> vector<2x8x8xf32>
    "tpu.trace_stop"() : () -> ()
    %38 = vector.shape_cast %37 : vector<2x8x8xf32> to vector<16x8xf32>
    %c0_20 = arith.constant 0 : index
    %c0_21 = arith.constant 0 : index
    %39 = vector.load %arg5[%c0_20, %c0_21] : memref<16x32xf32, #tpu.memory_space<vmem>>, vector<16x8xf32>
    tpu.vector_store %arg5[%c0_20, %c0_21], %38 {strides = array<i32>} : memref<16x32xf32, #tpu.memory_space<vmem>>, vector<16x8xf32>,
    %40 = vector.extract_strided_slice %17 {offsets = [0, 0, 8], sizes = [2, 8, 8], strides = [1, 1, 1]} : vector<2x8x32xf32> to vector<2x8x8xf32>
    %41 = vector.extract_strided_slice %19 {offsets = [0, 0, 8], sizes = [2, 8, 8], strides = [1, 1, 1]} : vector<2x8x32xf32> to vector<2x8x8xf32>
    %42 = vector.extract_strided_slice %21 {offsets = [0, 0, 8], sizes = [2, 8, 8], strides = [1, 1, 1]} : vector<2x8x32xf32> to vector<2x8x8xf32>
    "tpu.trace_start"() <{level = 10 : i32, message = "bqd,bkd->bqk"}> : () -> ()
    %cst_22 = arith.constant dense<0.000000e+00> : vector<2x8x8xf32>
    %43 = tpu.matmul %40, %41, %cst_22 {dimension_numbers = #tpu.dot_dimension_numbers<[2], [2], [1], [1], [0, 0, 0, 1, 1, 1], [0], [0]>} : vector<2x8x8xf32>, vector<2x8x8xf32>, vector<2x8x8xf32> -> vector<2x8x8xf32>
    "tpu.trace_stop"() : () -> ()
    %cst_23 = arith.constant dense<0xFF800000> : vector<2x8xf32>
    %44 = vector.multi_reduction <maximumf>, %43, %cst_23 [2] : vector<2x8x8xf32> to vector<2x8xf32>
    %45 = vector.shape_cast %44 : vector<2x8xf32> to vector<2x8x1xf32>
    %46 = vector.broadcast %45 : vector<2x8x1xf32> to vector<2x8x8xf32>
    %47 = arith.subf %43, %46 : vector<2x8x8xf32>
    %48 = math.exp %47 : vector<2x8x8xf32>
    %cst_24 = arith.constant dense<0.000000e+00> : vector<2x8xf32>
    %49 = vector.multi_reduction <add>, %48, %cst_24 [2] : vector<2x8x8xf32> to vector<2x8xf32>
    %50 = vector.shape_cast %49 : vector<2x8xf32> to vector<2x8x1xf32>
    %51 = vector.broadcast %50 : vector<2x8x1xf32> to vector<2x8x8xf32>
    %52 = arith.divf %48, %51 : vector<2x8x8xf32>
    %53 = arith.addf %36, %52 : vector<2x8x8xf32>
    "tpu.trace_start"() <{level = 10 : i32, message = "bqk,bkd->bqd"}> : () -> ()
    %cst_25 = arith.constant dense<0.000000e+00> : vector<2x8x8xf32>
    %54 = tpu.matmul %52, %42, %cst_25 {dimension_numbers = #tpu.dot_dimension_numbers<[2], [1], [1], [2], [0, 0, 0, 1, 1, 2], [0], [0]>} : vector<2x8x8xf32>, vector<2x8x8xf32>, vector<2x8x8xf32> -> vector<2x8x8xf32>
    "tpu.trace_stop"() : () -> ()
    %55 = vector.shape_cast %54 : vector<2x8x8xf32> to vector<16x8xf32>
    %c0_26 = arith.constant 0 : index
    %c8 = arith.constant 8 : index
    %56 = vector.load %arg5[%c0_26, %c8] : memref<16x32xf32, #tpu.memory_space<vmem>>, vector<16x8xf32>
    tpu.vector_store %arg5[%c0_26, %c8], %55 {strides = array<i32>} : memref<16x32xf32, #tpu.memory_space<vmem>>, vector<16x8xf32>,
    %57 = vector.extract_strided_slice %17 {offsets = [0, 0, 16], sizes = [2, 8, 8], strides = [1, 1, 1]} : vector<2x8x32xf32> to vector<2x8x8xf32>
    %58 = vector.extract_strided_slice %19 {offsets = [0, 0, 16], sizes = [2, 8, 8], strides = [1, 1, 1]} : vector<2x8x32xf32> to vector<2x8x8xf32>
    %59 = vector.extract_strided_slice %21 {offsets = [0, 0, 16], sizes = [2, 8, 8], strides = [1, 1, 1]} : vector<2x8x32xf32> to vector<2x8x8xf32>
    "tpu.trace_start"() <{level = 10 : i32, message = "bqd,bkd->bqk"}> : () -> ()
    %cst_27 = arith.constant dense<0.000000e+00> : vector<2x8x8xf32>
    %60 = tpu.matmul %57, %58, %cst_27 {dimension_numbers = #tpu.dot_dimension_numbers<[2], [2], [1], [1], [0, 0, 0, 1, 1, 1], [0], [0]>} : vector<2x8x8xf32>, vector<2x8x8xf32>, vector<2x8x8xf32> -> vector<2x8x8xf32>
    "tpu.trace_stop"() : () -> ()
    %cst_28 = arith.constant dense<0xFF800000> : vector<2x8xf32>
    %61 = vector.multi_reduction <maximumf>, %60, %cst_28 [2] : vector<2x8x8xf32> to vector<2x8xf32>
    %62 = vector.shape_cast %61 : vector<2x8xf32> to vector<2x8x1xf32>
    %63 = vector.broadcast %62 : vector<2x8x1xf32> to vector<2x8x8xf32>
    %64 = arith.subf %60, %63 : vector<2x8x8xf32>
    %65 = math.exp %64 : vector<2x8x8xf32>
    %cst_29 = arith.constant dense<0.000000e+00> : vector<2x8xf32>
    %66 = vector.multi_reduction <add>, %65, %cst_29 [2] : vector<2x8x8xf32> to vector<2x8xf32>
    %67 = vector.shape_cast %66 : vector<2x8xf32> to vector<2x8x1xf32>
    %68 = vector.broadcast %67 : vector<2x8x1xf32> to vector<2x8x8xf32>
    %69 = arith.divf %65, %68 : vector<2x8x8xf32>
    %70 = arith.addf %53, %69 : vector<2x8x8xf32>
    "tpu.trace_start"() <{level = 10 : i32, message = "bqk,bkd->bqd"}> : () -> ()
    %cst_30 = arith.constant dense<0.000000e+00> : vector<2x8x8xf32>
    %71 = tpu.matmul %69, %59, %cst_30 {dimension_numbers = #tpu.dot_dimension_numbers<[2], [1], [1], [2], [0, 0, 0, 1, 1, 2], [0], [0]>} : vector<2x8x8xf32>, vector<2x8x8xf32>, vector<2x8x8xf32> -> vector<2x8x8xf32>
    "tpu.trace_stop"() : () -> ()
    %72 = vector.shape_cast %71 : vector<2x8x8xf32> to vector<16x8xf32>
    %c0_31 = arith.constant 0 : index
    %c16 = arith.constant 16 : index
    %73 = vector.load %arg5[%c0_31, %c16] : memref<16x32xf32, #tpu.memory_space<vmem>>, vector<16x8xf32>
    tpu.vector_store %arg5[%c0_31, %c16], %72 {strides = array<i32>} : memref<16x32xf32, #tpu.memory_space<vmem>>, vector<16x8xf32>,
    %74 = vector.extract_strided_slice %17 {offsets = [0, 0, 24], sizes = [2, 8, 8], strides = [1, 1, 1]} : vector<2x8x32xf32> to vector<2x8x8xf32>
    %75 = vector.extract_strided_slice %19 {offsets = [0, 0, 24], sizes = [2, 8, 8], strides = [1, 1, 1]} : vector<2x8x32xf32> to vector<2x8x8xf32>
    %76 = vector.extract_strided_slice %21 {offsets = [0, 0, 24], sizes = [2, 8, 8], strides = [1, 1, 1]} : vector<2x8x32xf32> to vector<2x8x8xf32>
    "tpu.trace_start"() <{level = 10 : i32, message = "bqd,bkd->bqk"}> : () -> ()
    %cst_32 = arith.constant dense<0.000000e+00> : vector<2x8x8xf32>
    %77 = tpu.matmul %74, %75, %cst_32 {dimension_numbers = #tpu.dot_dimension_numbers<[2], [2], [1], [1], [0, 0, 0, 1, 1, 1], [0], [0]>} : vector<2x8x8xf32>, vector<2x8x8xf32>, vector<2x8x8xf32> -> vector<2x8x8xf32>
    "tpu.trace_stop"() : () -> ()
    %cst_33 = arith.constant dense<0xFF800000> : vector<2x8xf32>
    %78 = vector.multi_reduction <maximumf>, %77, %cst_33 [2] : vector<2x8x8xf32> to vector<2x8xf32>
    %79 = vector.shape_cast %78 : vector<2x8xf32> to vector<2x8x1xf32>
    %80 = vector.broadcast %79 : vector<2x8x1xf32> to vector<2x8x8xf32>
    %81 = arith.subf %77, %80 : vector<2x8x8xf32>
    %82 = math.exp %81 : vector<2x8x8xf32>
    %cst_34 = arith.constant dense<0.000000e+00> : vector<2x8xf32>
    %83 = vector.multi_reduction <add>, %82, %cst_34 [2] : vector<2x8x8xf32> to vector<2x8xf32>
    %84 = vector.shape_cast %83 : vector<2x8xf32> to vector<2x8x1xf32>
    %85 = vector.broadcast %84 : vector<2x8x1xf32> to vector<2x8x8xf32>
    %86 = arith.divf %82, %85 : vector<2x8x8xf32>
    %87 = arith.addf %70, %86 : vector<2x8x8xf32>
    "tpu.trace_start"() <{level = 10 : i32, message = "bqk,bkd->bqd"}> : () -> ()
    %cst_35 = arith.constant dense<0.000000e+00> : vector<2x8x8xf32>
    %88 = tpu.matmul %86, %76, %cst_35 {dimension_numbers = #tpu.dot_dimension_numbers<[2], [1], [1], [2], [0, 0, 0, 1, 1, 2], [0], [0]>} : vector<2x8x8xf32>, vector<2x8x8xf32>, vector<2x8x8xf32> -> vector<2x8x8xf32>
    "tpu.trace_stop"() : () -> ()
    %89 = vector.shape_cast %88 : vector<2x8x8xf32> to vector<16x8xf32>
    %c0_36 = arith.constant 0 : index
    %c24 = arith.constant 24 : index
    %90 = vector.load %arg5[%c0_36, %c24] : memref<16x32xf32, #tpu.memory_space<vmem>>, vector<16x8xf32>
    tpu.vector_store %arg5[%c0_36, %c24], %89 {strides = array<i32>} : memref<16x32xf32, #tpu.memory_space<vmem>>, vector<16x8xf32>,
    %cst_37 = arith.constant 2.500000e-01 : f32
    %91 = vector.broadcast %cst_37 : f32 to vector<2x8x8xf32>
    %92 = arith.mulf %87, %91 : vector<2x8x8xf32>
    %c0_38 = arith.constant 0 : index
    %c0_39 = arith.constant 0 : index
    %c0_40 = arith.constant 0 : index
    %93 = vector.load %arg4[%c0_38, %c0_39, %c0_40] : memref<2x8x8xf32, #tpu.memory_space<vmem>>, vector<2x8x8xf32>
    tpu.vector_store %arg4[%c0_38, %c0_39, %c0_40], %92 {strides = array<i32>} : memref<2x8x8xf32, #tpu.memory_space<vmem>>, vector<2x8x8xf32>,
    %c0_41 = arith.constant 0 : index
    %c0_42 = arith.constant 0 : index
    %94 = vector.load %arg5[%c0_41, %c0_42] : memref<16x32xf32, #tpu.memory_space<vmem>>, vector<16x32xf32>
    %cst_43 = arith.constant dense<0.000000e+00> : vector<16x32xf32>
    %95 = tpu.matmul %94, %3, %cst_43 {dimension_numbers = #tpu.dot_dimension_numbers<[1], [0], [0], [1], [0, 0, 1, 1], [], []>} : vector<16x32xf32>, vector<32x32xf32>, vector<16x32xf32> -> vector<16x32xf32>
    %96 = vector.broadcast %6 : vector<1x32xf32> to vector<16x32xf32>
    %97 = arith.addf %95, %96 : vector<16x32xf32>
    %98 = arith.addf %0, %97 : vector<16x32xf32>
    %cst_44 = arith.constant dense<0.000000e+00> : vector<16xf32>
    %99 = vector.multi_reduction <add>, %98, %cst_44 [1] : vector<16x32xf32> to vector<16xf32>
    %100 = vector.shape_cast %99 : vector<16xf32> to vector<16x1xf32>
    %cst_45 = arith.constant 3.200000e+01 : f32
    %101 = vector.broadcast %cst_45 : f32 to vector<16x1xf32>
    %102 = arith.divf %100, %101 : vector<16x1xf32>
    %103 = vector.broadcast %102 : vector<16x1xf32> to vector<16x32xf32>
    %104 = arith.subf %98, %103 : vector<16x32xf32>
    %105 = arith.mulf %104, %104 : vector<16x32xf32>
    %cst_46 = arith.constant dense<0.000000e+00> : vector<16xf32>
    %106 = vector.multi_reduction <add>, %105, %cst_46 [1] : vector<16x32xf32> to vector<16xf32>
    %107 = vector.shape_cast %106 : vector<16xf32> to vector<16x1xf32>
    %cst_47 = arith.constant 3.200000e+01 : f32
    %108 = vector.broadcast %cst_47 : f32 to vector<16x1xf32>
    %109 = arith.divf %107, %108 : vector<16x1xf32>
    %110 = vector.broadcast %102 : vector<16x1xf32> to vector<16x32xf32>
    %111 = arith.subf %98, %110 : vector<16x32xf32>
    %cst_48 = arith.constant 9.99999974E-6 : f32
    %112 = vector.broadcast %cst_48 : f32 to vector<16x1xf32>
    %113 = arith.addf %109, %112 : vector<16x1xf32>
    %114 = math.rsqrt %113 : vector<16x1xf32>
    %115 = vector.broadcast %114 : vector<16x1xf32> to vector<16x32xf32>
    %116 = arith.mulf %111, %115 : vector<16x32xf32>
    %117 = vector.broadcast %9 : vector<1x32xf32> to vector<16x32xf32>
    %118 = arith.mulf %116, %117 : vector<16x32xf32>
    %119 = vector.broadcast %10 : vector<1x32xf32> to vector<16x32xf32>
    %120 = arith.addf %118, %119 : vector<16x32xf32>
    %cst_49 = arith.constant dense<0.000000e+00> : vector<16x64xf32>
    %121 = tpu.matmul %120, %2, %cst_49 {dimension_numbers = #tpu.dot_dimension_numbers<[1], [0], [0], [1], [0, 0, 1, 1], [], []>} : vector<16x32xf32>, vector<32x64xf32>, vector<16x64xf32> -> vector<16x64xf32>
    %122 = vector.broadcast %7 : vector<1x64xf32> to vector<16x64xf32>
    %123 = arith.addf %121, %122 : vector<16x64xf32>
    %cst_50 = arith.constant 0.000000e+00 : f32
    %124 = vector.broadcast %cst_50 : f32 to vector<16x64xf32>
    %125 = arith.maximumf %123, %124 : vector<16x64xf32>
    %cst_51 = arith.constant dense<0.000000e+00> : vector<16x32xf32>
    %126 = tpu.matmul %125, %4, %cst_51 {dimension_numbers = #tpu.dot_dimension_numbers<[1], [0], [0], [1], [0, 0, 1, 1], [], []>} : vector<16x64xf32>, vector<64x32xf32>, vector<16x32xf32> -> vector<16x32xf32>
    %127 = vector.broadcast %8 : vector<1x32xf32> to vector<16x32xf32>
    %128 = arith.addf %126, %127 : vector<16x32xf32>
    %129 = arith.addf %120, %128 : vector<16x32xf32>
    %cst_52 = arith.constant dense<0.000000e+00> : vector<16xf32>
    %130 = vector.multi_reduction <add>, %129, %cst_52 [1] : vector<16x32xf32> to vector<16xf32>
    %131 = vector.shape_cast %130 : vector<16xf32> to vector<16x1xf32>
    %cst_53 = arith.constant 3.200000e+01 : f32
    %132 = vector.broadcast %cst_53 : f32 to vector<16x1xf32>
    %133 = arith.divf %131, %132 : vector<16x1xf32>
    %134 = vector.broadcast %133 : vector<16x1xf32> to vector<16x32xf32>
    %135 = arith.subf %129, %134 : vector<16x32xf32>
    %136 = arith.mulf %135, %135 : vector<16x32xf32>
    %cst_54 = arith.constant dense<0.000000e+00> : vector<16xf32>
    %137 = vector.multi_reduction <add>, %136, %cst_54 [1] : vector<16x32xf32> to vector<16xf32>
    %138 = vector.shape_cast %137 : vector<16xf32> to vector<16x1xf32>
    %cst_55 = arith.constant 3.200000e+01 : f32
    %139 = vector.broadcast %cst_55 : f32 to vector<16x1xf32>
    %140 = arith.divf %138, %139 : vector<16x1xf32>
    %141 = vector.broadcast %133 : vector<16x1xf32> to vector<16x32xf32>
    %142 = arith.subf %129, %141 : vector<16x32xf32>
    %cst_56 = arith.constant 9.99999974E-6 : f32
    %143 = vector.broadcast %cst_56 : f32 to vector<16x1xf32>
    %144 = arith.addf %140, %143 : vector<16x1xf32>
    %145 = math.rsqrt %144 : vector<16x1xf32>
    %146 = vector.broadcast %145 : vector<16x1xf32> to vector<16x32xf32>
    %147 = arith.mulf %142, %146 : vector<16x32xf32>
    %148 = vector.broadcast %11 : vector<1x32xf32> to vector<16x32xf32>
    %149 = arith.mulf %147, %148 : vector<16x32xf32>
    %150 = vector.broadcast %12 : vector<1x32xf32> to vector<16x32xf32>
    %151 = arith.addf %149, %150 : vector<16x32xf32>
    %c0_57 = arith.constant 0 : index
    %c0_58 = arith.constant 0 : index
    %152 = vector.load %arg3[%c0_57, %c0_58] : memref<16x32xf32, #tpu.memory_space<vmem>>, vector<16x32xf32>
    tpu.vector_store %arg3[%c0_57, %c0_58], %151 {strides = array<i32>} : memref<16x32xf32, #tpu.memory_space<vmem>>, vector<16x32xf32>,
    return
  }
}

</mosaic_0001>

<bundles_post_ra>
// kernel: tpu_custom_call.1
= control target key start
LH: loop header
LB: loop body
LE: loop exit
PB: predicated region body
PF: predicated region fallthrough
CT: control target
= control target key end

     0   :  { %10 = vsyncpa [#allocation4], 0  ;;  %s2568_s0 = inlined_call_operand.hbm [shape: f32[16,32], index: 0, kind: input, shape index: {}]   ;;  %s2569_s1 = inlined_call_operand.hbm [shape: f32[160,96], index: 1, kind: input, shape index: {}]   ;;  %s2570_s2 = inlined_call_operand.hbm [shape: f32[8,96], index: 2, kind: input, shape index: {}]   ;;  %s2571_s3 = inlined_call_operand.hbm [shape: f32[16,32], index: 3, kind: output, shape index: {0}]   ;;  %s2572_s4 = inlined_call_operand.hbm [shape: f32[2,8,8], index: 4, kind: output, shape index: {1}]  }
   0x1   :  { %11 = vsyncpa [#allocation7], 0 }
   0x2   :  { %12 = vsyncpa [#allocation5], 0 }
   0x3   :  { %13 = vsyncpa [#allocation11], 0  ;;  %s2318_s15 = smov [#allocation6]   ;;  %s2319_s17 = smov [#allocation3]  }
   0x4   :  { %s31_s16 = sshll.u32 %s2318_s15, 4  ;;  %s19_s18 = sshll.u32 %s2319_s17, 4  ;;  %s32_s16 = int_to_ptr.vmem [resolvable:$true] %s31_s16  ;;  %s20_s18 = int_to_ptr.vmem [resolvable:$true] %s19_s18 }
   0x5   :  { %s2218_s19 = scalar_lea.vmem %s32_s16, 2560  ;;  %p2223_p1 = scmp.lt.s32.totalorder %s32_s16, %s32_s16 }
   0x6   :  { %p2219_p0 = scmp.ne.s32.totalorder %s32_s16, %s2218_s19  ;;  %p2224_p2 = scmp.lt.s32.totalorder %s2218_s19, %s2218_s19 }
   0x8   :  { %p2225_p3 = por %p2224_p2, %p2223_p1 }
   0xa   :  { %p2226_p4 = pnand %p2225_p3, %p2219_p0 }
   0xc   :  { %2229 = shalt.err (!%p2226_p4)
}
   0xd   :  { %s2320_s20 = smov 128   ;;  %s2321_s21 = smov 8  }
   0xe   :  { %37 = dma.hbm_to_vmem [thread:$0]  %s2569_s1, 2560, %s32_s16, [#allocation7], %s2320_s20, %s2320_s20, %s2321_s21  }
   0xf   :  { %s2238_s24 = scalar_lea.vmem %s20_s18, 256  ;;  %p2243_p6 = scmp.lt.s32.totalorder %s20_s18, %s20_s18 }
  0x10   :  { %p2239_p5 = scmp.ne.s32.totalorder %s20_s18, %s2238_s24  ;;  %p2244_p7 = scmp.lt.s32.totalorder %s2238_s24, %s2238_s24 }
  0x12   :  { %p2245_p8 = por %p2244_p7, %p2243_p6 }
  0x14   :  { %p2246_p9 = pnand %p2245_p8, %p2239_p5 }
  0x16   :  { %2249 = shalt.err (!%p2246_p9)
}
  0x17   :  { %25 = dma.hbm_to_vmem [thread:$0]  %s2568_s0, 256, %s20_s18, [#allocation4], %s2320_s20, %s2320_s20, %s2321_s21  }
  0x18   :  { %s2322_s27 = smov [#allocation8]  }
  0x19   :  { %s44_s28 = sshll.u32 %s2322_s27, 4  ;;  %s45_s28 = int_to_ptr.vmem [resolvable:$true] %s44_s28 }
  0x1a   :  { %s2258_s29 = scalar_lea.vmem %s45_s28, 128  ;;  %p2263_p11 = scmp.lt.s32.totalorder %s45_s28, %s45_s28 }
  0x1b   :  { %p2259_p10 = scmp.ne.s32.totalorder %s45_s28, %s2258_s29  ;;  %p2264_p12 = scmp.lt.s32.totalorder %s2258_s29, %s2258_s29 }
  0x1d   :  { %p2265_p13 = por %p2264_p12, %p2263_p11 }
  0x1f   :  { %p2266_p0 = pnand %p2265_p13, %p2259_p10 }
  0x21   :  { %2269 = shalt.err (!%p2266_p0)
}
  0x22   :  { %47 = dma.hbm_to_vmem [thread:$0]  %s2570_s2, 128, %s45_s28, [#allocation7]  }
  0x23   :  { %2310 = dma.done.wait [#allocation4], 256  }
  0x24   :  { %2311 = vsyncadd [#allocation4], 4294967040 }
  0x25   :  { %2312 = dma.done.wait [#allocation7], 2688  }
  0x26   :  { %2313 = vsyncadd [#allocation7], 4294964608  ;;  %vm91_vm0 = vcmask 261120   ;;  %v62_v0 = vld [vmem:[#allocation6 + $0x18] sm:$0xff]  ;;  %v61_v1 = vld [vmem:[#allocation6 + $0x10] sm:$0xff]  ;;  %v2323_v6 = vmov 0.0  }
  0x27   :  { %2016 = vmatprep.subr.mxu1 %v62_v0  ;;  %v2380_v2 = vld [vmem:[#allocation3] sm:$0xff]  ;;  %v60_v3 = vld [vmem:[#allocation6 + $0x8] sm:$0xff]  ;;  %v59_v4 = vld [vmem:[#allocation6] sm:$0xff]  ;;  %2037 = vmatprep.subr.mxu0 %v2323_v6  ;;  %vm2324_vm1 = vmmov 0   ;;  %s2325_s0 = smov 96   ;;  %vm176_vm2 = vcmask 64512  }
  0x28   :  { %2017 = vmatpush3.msra.mxu1 %v62_v0  ;;  %2024 = vmatprep.mubr.msk.f32.mxu1 %vm91_vm0, %v2380_v2  ;;  %v2384_v5 = vld [vmem:[#allocation3 + $0x8] sm:$0xff]  ;;  %v1916_v8 = vld [vmem:[#allocation8] ss:$0 sm:$0xff]  ;;  %s2326_s2 = smov 64   ;;  %s2327_s5 = smov 88   ;;  %vm846_vm3 = vcmask 130112  }
  0x29   :  { %2018 = vmatprep.subr.mxu1 %v61_v1  ;;  %2039 = vmatprep.mubr.msk.f32.mxu0 %vm2324_vm1, %v2323_v6  ;;  %s2328_s6 = smov 120   ;;  %s2329_s7 = smov 56   ;;  %vm1189_vm4 = vcmask 195712   ;;  %vm1532_vm5 = vcmask 261312   ;;  %vm1758_vm6 = vcmask 523264  }
  0x2a   :  { %2019 = vmatpush3.msra.mxu1 %v61_v1  ;;  %s2330_s8 = smov 80   ;;  %s2331_s9 = smov 112  }
  0x2b   :  { %2020 = vmatprep.subr.mxu1 %v60_v3  ;;  %s2332_s10 = smov 48   ;;  %s2333_s11 = smov 72  }
  0x2c   :  { %2021 = vmatpush3.msra.mxu1 %v60_v3  ;;  %s2334_s12 = smov 104   ;;  %s2335_s13 = smov 40  }
  0x2d   :  { %2022 = vmatprep.subr.mxu1 %v59_v4  ;;  %s2336_s14 = smov 16   ;;  %s2337_s15 = smov 24  }
  0x2e   :  { %2023 = vmatpush3.msra.mxu1 %v59_v4  ;;  %s2338_s16 = smov [#allocation10]  }
  0x2f   :  { %2025 = vmatmul.mubr.msk.f32.vlgmr.msra.gmra.mxu1 %vm91_vm0, %v2384_v5  ;;  %2027 = vmatprep.subr.mxu1 %v2323_v6  ;;  %s1899_s17 = sshll.u32 %s2338_s16, 4  ;;  %s1900_s17 = int_to_ptr.vmem [resolvable:$true] %s1899_s17 }
  0x30   :  { %2029 = vmatprep.mubr.msk.f32.mxu1 %vm2324_vm1, %v2323_v6  ;;  %s2270_s18 = scalar_lea.vmem %s1900_s17, 256  ;;  %p2275_p2 = scmp.lt.s32.totalorder %s1900_s17, %s1900_s17 }
  0x31   :  { %p2271_p1 = scmp.ne.s32.totalorder %s1900_s17, %s2270_s18  ;;  %p2276_p3 = scmp.lt.s32.totalorder %s2270_s18, %s2270_s18 }
  0x33   :  { %p2277_p4 = por %p2276_p3, %p2275_p2 }
  0x35   :  { %p2278_p5 = pnand %p2277_p4, %p2271_p1 }
  0xef   :  { %v2026_v7 = vpop.f32.mrf.mxu1 }
  0xf0   :  { %v2397_v11 = vadd.f32 %v2026_v7, %v1916_v8 }
  0xf1   :  { %v164_v9 = vpop.f32.mrf.mxu1 }
  0xf2   :  { %v2394_v10 = vadd.f32 %v1916_v8, %v164_v9 }
  0xf4   :  { %174 = vrot.lane.b32.xlu0 %v2394_v10, %s2325_s0 }
  0xf8   :  { %252 = vrot.lane.b32.xlu0 %v2397_v11, %s2325_s0 }
 0x166   :  { %v175_v12 = vpop.permute.xlu0 %174 }
 0x167   :  { %2028 = vmatpush3.xpose.msk.msra.mxu1 %vm176_vm2, %v175_v12 }
 0x168   :  { %2032 = vmatprep.subr.mxu1 %v2323_v6 }
 0x16a   :  { %2030 = vmatmul.mubr.msk.f32.vlgmr.msra.gmra.mxu1 %vm176_vm2, %v2394_v10  ;;  %v253_v13 = vpop.permute.xlu0 %252 }
 0x16b   :  { %2033 = vmatpush3.xpose.msk.msra.mxu1 %vm176_vm2, %v253_v13  ;;  %2034 = vmatprep.mubr.msk.f32.mxu1 %vm2324_vm1, %v2323_v6 }
 0x16c   :  { %2042 = vmatprep.subr.mxu1 %v2323_v6 }
 0x16e   :  { %2035 = vmatmul.mubr.msk.f32.vlgmr.msra.gmra.mxu1 %vm176_vm2, %v2397_v11 }
 0x16f   :  { %2044 = vmatprep.mubr.msk.f32.mxu1 %vm2324_vm1, %v2323_v6 }
 0x22a   :  { %v247_v14 = vpop.f32.mrf.mxu1 }
 0x22b   :  { %v328_v15 = vsel %vm176_vm2, %v247_v14, -inf }
 0x22c   :  { %329 = vmax.xlane.f32.xlu1 %v328_v15  ;;  %v2031_v16 = vpop.f32.mrf.mxu1 }
 0x22e   :  { %v324_v17 = vpop.f32.mrf.mxu1 }
 0x22f   :  { %v331_v18 = vsel %vm176_vm2, %v324_v17, -inf }
 0x230   :  { %332 = vmax.xlane.f32.xlu1 %v331_v18  ;;  %v2036_v19 = vpop.f32.mrf.mxu1 }
 0x241   :  { %352 = vrot.lane.b32.xlu1 %v2394_v10, %s2326_s2 }
 0x245   :  { %428 = vrot.lane.b32.xlu1 %v2397_v11, %s2326_s2 }
 0x249   :  { %508 = vrot.lane.b32.xlu1 %v2394_v10, %s2327_s5 }
 0x24d   :  { %586 = vrot.lane.b32.xlu1 %v2397_v11, %s2327_s5 }
 0x2b5   :  { %v330_v20 = vpop.xlane.xlu1 %329 }
 0x2b6   :  { %v334_v21 = vsub.f32 %v247_v14, %v330_v20 }
 0x2b8   :  { %v336_v22 = vmul.f32 1.442695, %v334_v21 }
 0x2b9   :  { %v333_v23 = vpop.xlane.xlu1 %332 }
 0x2ba   :  { %2170 = vpow2.f32 %v336_v22  ;;  %v335_v24 = vsub.f32 %v324_v17, %v333_v23 }
 0x2bc   :  { %v338_v25 = vmul.f32 1.442695, %v335_v24 }
 0x2bd   :  { %v353_v26 = vpop.permute.xlu1 %352 }
 0x2be   :  { %2172 = vpow2.f32 %v338_v25  ;;  %2038 = vmatpush3.msra.mxu0 %v353_v26 }
 0x2bf   :  { %2047 = vmatprep.subr.mxu0 %v2323_v6 }
 0x2c1   :  { %v429_v27 = vpop.permute.xlu1 %428 }
 0x2c2   :  { %2043 = vmatpush3.msra.mxu1 %v429_v27 }
 0x2c3   :  { %2052 = vmatprep.subr.mxu1 %v2323_v6 }
 0x2c5   :  { %v509_v32 = vpop.permute.xlu1 %508 }
 0x2c7   :  { %v2171_v28 = vpop.eup %2170 }
 0x2c8   :  { %v340_v29 = vsel %vm176_vm2, %v2171_v28, 0.0 }
 0x2c9   :  { %341 = vadd.xlane.f32.xlu0 %v340_v29  ;;  %v587_v33 = vpop.permute.xlu1 %586 }
 0x2cb   :  { %v2173_v30 = vpop.eup %2172 }
 0x2cc   :  { %v343_v31 = vsel %vm176_vm2, %v2173_v30, 0.0 }
 0x2cd   :  { %344 = vadd.xlane.f32.xlu1 %v343_v31 }
 0x2de   :  { %584 = vrot.lane.b32.xlu1 %v2397_v11, %s2328_s6 }
 0x2df   :  { %506 = vrot.lane.b32.xlu0 %v2394_v10, %s2328_s6 }
 0x352   :  { %v342_v34 = vpop.xlane.xlu0 %341 }
 0x353   :  { %2174 = vrcp.f32 %v342_v34 }
 0x356   :  { %v345_v35 = vpop.xlane.xlu1 %344  ;;  %v507_v40 = vpop.permute.xlu0 %506 }
 0x357   :  { %2176 = vrcp.f32 %v345_v35 }
 0x35a   :  { %v585_v41 = vpop.permute.xlu1 %584 }
 0x360   :  { %v2175_v36 = vpop.eup %2174 }
 0x361   :  { %v2424_v37 = vmul.f32 %v2175_v36, %v2171_v28 }
 0x363   :  { %2040 = vmatmul.mubr.msk.f32.vlgmr.msra.gmra.mxu0 %vm176_vm2, %v2424_v37 }
 0x364   :  { %v2177_v38 = vpop.eup %2176  ;;  %2048 = vmatpush3.xpose.msk.msra.mxu0 %vm176_vm2, %v509_v32  ;;  %2049 = vmatprep.mubr.msk.f32.mxu0 %vm2324_vm1, %v2323_v6 }
 0x365   :  { %v2431_v39 = vmul.f32 %v2177_v38, %v2173_v30  ;;  %2057 = vmatprep.subr.mxu0 %v2323_v6 }
 0x367   :  { %2045 = vmatmul.mubr.msk.f32.vlgmr.msra.gmra.mxu1 %vm176_vm2, %v2431_v39  ;;  %2050 = vmatmul.mubr.msk.f32.vlgmr.msra.gmra.mxu0 %vm176_vm2, %v507_v40 }
 0x368   :  { %2053 = vmatpush3.xpose.msk.msra.mxu1 %vm176_vm2, %v587_v33  ;;  %2054 = vmatprep.mubr.msk.f32.mxu1 %vm2324_vm1, %v2323_v6 }
 0x369   :  { %2062 = vmatprep.subr.mxu1 %v2323_v6  ;;  %2059 = vmatprep.mubr.msk.f32.mxu0 %vm2324_vm1, %v2323_v6 }
 0x36b   :  { %2055 = vmatmul.mubr.msk.f32.vlgmr.msra.gmra.mxu1 %vm176_vm2, %v585_v41 }
 0x36c   :  { %2064 = vmatprep.mubr.msk.f32.mxu1 %vm2324_vm1, %v2323_v6 }
 0x423   :  { %v424_v42 = vpop.f32.mrf.mxu0 }
 0x424   :  { %504 = vst.msk [vmem:[#allocation2] sm:$0xff] %vm176_vm2, %v424_v42 }
 0x425   :  { %v2041_v43 = vpop.f32.mrf.mxu0 }
 0x427   :  { %v500_v44 = vpop.f32.mrf.mxu1  ;;  %v580_v45 = vpop.f32.mrf.mxu0 }
 0x428   :  { %505 = vst.msk [vmem:[#allocation2 + $0x8] sm:$0xff] %vm176_vm2, %v500_v44  ;;  %v662_v46 = vsel %vm176_vm2, %v580_v45, -inf }
 0x429   :  { %v2046_v47 = vpop.f32.mrf.mxu1  ;;  %663 = vmax.xlane.f32.xlu1 %v662_v46  ;;  %v2051_v48 = vpop.f32.mrf.mxu0 }
 0x42b   :  { %v658_v49 = vpop.f32.mrf.mxu1 }
 0x42c   :  { %v665_v50 = vsel %vm176_vm2, %v658_v49, -inf }
 0x42d   :  { %666 = vmax.xlane.f32.xlu0 %v665_v50  ;;  %v2056_v51 = vpop.f32.mrf.mxu1 }
 0x43a   :  { %686 = vrot.lane.b32.xlu1 %v2394_v10, %s2329_s7 }
 0x43e   :  { %851 = vrot.lane.b32.xlu1 %v2394_v10, %s2330_s8 }
 0x442   :  { %929 = vrot.lane.b32.xlu1 %v2397_v11, %s2330_s8 }
 0x443   :  { %762 = vrot.lane.b32.xlu0 %v2397_v11, %s2329_s7 }
 0x447   :  { %849 = vrot.lane.b32.xlu0 %v2394_v10, %s2331_s9 }
 0x4b2   :  { %v664_v52 = vpop.xlane.xlu1 %663 }
 0x4b3   :  { %v668_v53 = vsub.f32 %v580_v45, %v664_v52 }
 0x4b5   :  { %v670_v54 = vmul.f32 1.442695, %v668_v53 }
 0x4b6   :  { %v687_v55 = vpop.permute.xlu1 %686  ;;  %v667_v56 = vpop.xlane.xlu0 %666 }
 0x4b7   :  { %2178 = vpow2.f32 %v670_v54  ;;  %v669_v57 = vsub.f32 %v658_v49, %v667_v56  ;;  %2058 = vmatpush3.msra.mxu0 %v687_v55 }
 0x4b8   :  { %2067 = vmatprep.subr.mxu0 %v2323_v6 }
 0x4b9   :  { %v672_v58 = vmul.f32 1.442695, %v669_v57 }
 0x4ba   :  { %v763_v59 = vpop.permute.xlu0 %762  ;;  %v852_v0 = vpop.permute.xlu1 %851 }
 0x4bb   :  { %2180 = vpow2.f32 %v672_v58  ;;  %2063 = vmatpush3.msra.mxu1 %v763_v59 }
 0x4bc   :  { %2072 = vmatprep.subr.mxu1 %v2323_v6 }
 0x4be   :  { %v930_v1 = vpop.permute.xlu1 %929  ;;  %v850_v13 = vpop.permute.xlu0 %849 }
 0x4c4   :  { %v2179_v60 = vpop.eup %2178 }
 0x4c5   :  { %v674_v61 = vsel %vm176_vm2, %v2179_v60, 0.0 }
 0x4c6   :  { %675 = vadd.xlane.f32.xlu1 %v674_v61 }
 0x4c8   :  { %v2181_v62 = vpop.eup %2180 }
 0x4c9   :  { %v677_v63 = vsel %vm176_vm2, %v2181_v62, 0.0 }
 0x4ca   :  { %678 = vadd.xlane.f32.xlu1 %v677_v63 }
 0x4db   :  { %927 = vrot.lane.b32.xlu1 %v2397_v11, %s2331_s9 }
 0x54f   :  { %v676_v3 = vpop.xlane.xlu1 %675 }
 0x550   :  { %2182 = vrcp.f32 %v676_v3 }
 0x553   :  { %v679_v4 = vpop.xlane.xlu1 %678 }
 0x554   :  { %2184 = vrcp.f32 %v679_v4 }
 0x557   :  { %v928_v14 = vpop.permute.xlu1 %927 }
 0x55d   :  { %v2183_v7 = vpop.eup %2182 }
 0x55e   :  { %v2460_v8 = vmul.f32 %v2183_v7, %v2179_v60 }
 0x560   :  { %2060 = vmatmul.mubr.msk.f32.vlgmr.msra.gmra.mxu0 %vm176_vm2, %v2460_v8  ;;  %v684_v44 = vadd.f32 %v2460_v8, %v2424_v37 }
 0x561   :  { %v2185_v9 = vpop.eup %2184  ;;  %2068 = vmatpush3.xpose.msk.msra.mxu0 %vm176_vm2, %v852_v0  ;;  %2069 = vmatprep.mubr.msk.f32.mxu0 %vm2324_vm1, %v2323_v6 }
 0x562   :  { %v2467_v12 = vmul.f32 %v2185_v9, %v2181_v62  ;;  %2077 = vmatprep.subr.mxu0 %v2323_v6 }
 0x564   :  { %2065 = vmatmul.mubr.msk.f32.vlgmr.msra.gmra.mxu1 %vm176_vm2, %v2467_v12  ;;  %2070 = vmatmul.mubr.msk.f32.vlgmr.msra.gmra.mxu0 %vm176_vm2, %v850_v13  ;;  %v685_v49 = vadd.f32 %v2467_v12, %v2431_v39 }
 0x565   :  { %2073 = vmatpush3.xpose.msk.msra.mxu1 %vm176_vm2, %v930_v1  ;;  %2074 = vmatprep.mubr.msk.f32.mxu1 %vm2324_vm1, %v2323_v6 }
 0x566   :  { %2082 = vmatprep.subr.mxu1 %v2323_v6  ;;  %2079 = vmatprep.mubr.msk.f32.mxu0 %vm2324_vm1, %v2323_v6 }
 0x568   :  { %2075 = vmatmul.mubr.msk.f32.vlgmr.msra.gmra.mxu1 %vm176_vm2, %v928_v14 }
 0x569   :  { %2084 = vmatprep.mubr.msk.f32.mxu1 %vm2324_vm1, %v2323_v6 }
 0x620   :  { %v2482_v15 = vpop.f32.mrf.mxu0 }
 0x622   :  { %v2061_v16 = vpop.f32.mrf.mxu0 }
 0x624   :  { %v2484_v17 = vpop.f32.mrf.mxu1  ;;  %v923_v18 = vpop.f32.mrf.mxu0 }
 0x625   :  { %v1005_v19 = vsel %vm176_vm2, %v923_v18, -inf }
 0x626   :  { %v2066_v20 = vpop.f32.mrf.mxu1  ;;  %1006 = vmax.xlane.f32.xlu0 %v1005_v19  ;;  %v2071_v21 = vpop.f32.mrf.mxu0 }
 0x628   :  { %v1001_v22 = vpop.f32.mrf.mxu1 }
 0x629   :  { %v1008_v23 = vsel %vm176_vm2, %v1001_v22, -inf }
 0x62a   :  { %1009 = vmax.xlane.f32.xlu1 %v1008_v23  ;;  %v2076_v24 = vpop.f32.mrf.mxu1 }
 0x63b   :  { %1029 = vrot.lane.b32.xlu1 %v2394_v10, %s2332_s10 }
 0x63c   :  { %1105 = vrot.lane.b32.xlu0 %v2397_v11, %s2332_s10 }
 0x63f   :  { %1194 = vrot.lane.b32.xlu1 %v2394_v10, %s2333_s11 }
 0x643   :  { %1272 = vrot.lane.b32.xlu1 %v2397_v11, %s2333_s11 }
 0x647   :  { %1270 = vrot.lane.b32.xlu1 %v2397_v11, %s2334_s12 }
 0x6af   :  { %v1007_v25 = vpop.xlane.xlu0 %1006 }
 0x6b0   :  { %v1011_v26 = vsub.f32 %v923_v18, %v1007_v25  ;;  %v70_v25 = vld [vmem:[#allocation6 + $0x58] sm:$0xff] }
 0x6b2   :  { %v1013_v27 = vmul.f32 1.442695, %v1011_v26  ;;  %v69_v26 = vld [vmem:[#allocation6 + $0x50] sm:$0xff] }
 0x6b3   :  { %v1010_v28 = vpop.xlane.xlu1 %1009  ;;  %v1106_v29 = vpop.permute.xlu0 %1105 }
 0x6b4   :  { %2186 = vpow2.f32 %v1013_v27  ;;  %v1012_v30 = vsub.f32 %v1001_v22, %v1010_v28  ;;  %2083 = vmatpush3.msra.mxu1 %v1106_v29  ;;  %v68_v27 = vld [vmem:[#allocation6 + $0x48] sm:$0xff]  ;;  %v67_v28 = vld [vmem:[#allocation6 + $0x40] sm:$0xff] }
 0x6b5   :  { %2092 = vmatprep.subr.mxu1 %v2323_v6 }
 0x6b6   :  { %v1015_v31 = vmul.f32 1.442695, %v1012_v30 }
 0x6b7   :  { %v1030_v32 = vpop.permute.xlu1 %1029 }
 0x6b8   :  { %2188 = vpow2.f32 %v1015_v31  ;;  %2078 = vmatpush3.msra.mxu0 %v1030_v32 }
 0x6b9   :  { %2087 = vmatprep.subr.mxu0 %v2323_v6 }
 0x6bb   :  { %v1195_v41 = vpop.permute.xlu1 %1194 }
 0x6bf   :  { %v1273_v47 = vpop.permute.xlu1 %1272 }
 0x6c1   :  { %v2187_v33 = vpop.eup %2186 }
 0x6c2   :  { %v1017_v34 = vsel %vm176_vm2, %v2187_v33, 0.0 }
 0x6c3   :  { %1018 = vadd.xlane.f32.xlu0 %v1017_v34  ;;  %v1271_v51 = vpop.permute.xlu1 %1270 }
 0x6c5   :  { %v2189_v35 = vpop.eup %2188 }
 0x6c6   :  { %v1020_v36 = vsel %vm176_vm2, %v2189_v35, 0.0 }
 0x6c7   :  { %1021 = vadd.xlane.f32.xlu0 %v1020_v36 }
 0x6dd   :  { %1192 = vrot.lane.b32.xlu0 %v2394_v10, %s2334_s12 }
 0x74c   :  { %v1019_v38 = vpop.xlane.xlu0 %1018 }
 0x74d   :  { %2190 = vrcp.f32 %v1019_v38  ;;  %v1943_v38 = vld [vmem:[#allocation8 + $0x1] ss:$0 sm:$0xff] }
 0x750   :  { %v1022_v40 = vpop.xlane.xlu0 %1021 }
 0x751   :  { %2192 = vrcp.f32 %v1022_v40 }
 0x754   :  { %v1193_v50 = vpop.permute.xlu0 %1192 }
 0x75a   :  { %v2191_v42 = vpop.eup %2190 }
 0x75b   :  { %v1024_v43 = vmul.f32 %v2191_v42, %v2187_v33 }
 0x75d   :  { %2080 = vmatmul.mubr.msk.f32.vlgmr.msra.gmra.mxu0 %vm176_vm2, %v1024_v43  ;;  %v2501_v45 = vadd.f32 %v1024_v43, %v684_v44 }
 0x75e   :  { %v2193_v46 = vpop.eup %2192  ;;  %2088 = vmatpush3.xpose.msk.msra.mxu0 %vm176_vm2, %v1195_v41  ;;  %2089 = vmatprep.mubr.msk.f32.mxu0 %vm2324_vm1, %v2323_v6 }
 0x75f   :  { %v1026_v48 = vmul.f32 %v2193_v46, %v2189_v35  ;;  %2097 = vmatprep.subr.mxu0 %v2323_v6 }
 0x761   :  { %2085 = vmatmul.mubr.msk.f32.vlgmr.msra.gmra.mxu1 %vm176_vm2, %v1026_v48  ;;  %2090 = vmatmul.mubr.msk.f32.vlgmr.msra.gmra.mxu0 %vm176_vm2, %v1193_v50  ;;  %v2511_v37 = vadd.f32 %v1026_v48, %v685_v49 }
 0x762   :  { %2093 = vmatpush3.xpose.msk.msra.mxu1 %vm176_vm2, %v1273_v47  ;;  %2094 = vmatprep.mubr.msk.f32.mxu1 %vm2324_vm1, %v2323_v6 }
 0x763   :  { %2102 = vmatprep.subr.mxu1 %v2323_v6  ;;  %2099 = vmatprep.mubr.msk.f32.mxu0 %vm2324_vm1, %v2323_v6 }
 0x765   :  { %2095 = vmatmul.mubr.msk.f32.vlgmr.msra.gmra.mxu1 %vm176_vm2, %v1271_v51 }
 0x766   :  { %2104 = vmatprep.mubr.msk.f32.mxu1 %vm2324_vm1, %v2323_v6 }
 0x81d   :  { %v1101_v39 = vpop.f32.mrf.mxu0 }
 0x81f   :  { %v2081_v52 = vpop.f32.mrf.mxu0 }
 0x821   :  { %v1177_v53 = vpop.f32.mrf.mxu1  ;;  %v1266_v54 = vpop.f32.mrf.mxu0 }
 0x822   :  { %v1348_v55 = vsel %vm176_vm2, %v1266_v54, -inf }
 0x823   :  { %v2086_v56 = vpop.f32.mrf.mxu1  ;;  %1349 = vmax.xlane.f32.xlu0 %v1348_v55  ;;  %v2091_v57 = vpop.f32.mrf.mxu0  ;;  %v66_v55 = vld [vmem:[#allocation6 + $0x38] sm:$0xff] }
 0x824   :  { %v64_v56 = vld [vmem:[#allocation6 + $0x28] sm:$0xff]  ;;  %v63_v57 = vld [vmem:[#allocation6 + $0x20] sm:$0xff] }
 0x825   :  { %v1344_v58 = vpop.f32.mrf.mxu1 }
 0x826   :  { %v1351_v59 = vsel %vm176_vm2, %v1344_v58, -inf }
 0x827   :  { %1352 = vmax.xlane.f32.xlu1 %v1351_v59  ;;  %v2096_v60 = vpop.f32.mrf.mxu1  ;;  %v77_v59 = vld [vmem:[#allocation6 + $0x90] sm:$0xff] }
 0x828   :  { %v76_v60 = vld [vmem:[#allocation6 + $0x88] sm:$0xff] }
 0x838   :  { %1372 = vrot.lane.b32.xlu1 %v2394_v10, %s2335_s13 }
 0x83c   :  { %840 = vrot.lane.b32.xlu1 %v2482_v15, %s2321_s21 }
 0x840   :  { %842 = vrot.lane.b32.xlu1 %v2484_v17, %s2321_s21 }
 0x844   :  { %1185 = vrot.lane.b32.xlu1 %v1177_v53, %s2336_s14 }
 0x8ac   :  { %v1350_v6 = vpop.xlane.xlu0 %1349 }
 0x8ad   :  { %v1354_v61 = vsub.f32 %v1266_v54, %v1350_v6  ;;  %v75_v6 = vld [vmem:[#allocation6 + $0x80] sm:$0xff] }
 0x8af   :  { %v1356_v62 = vmul.f32 1.442695, %v1354_v61 }
 0x8b0   :  { %v1353_v63 = vpop.xlane.xlu1 %1352 }
 0x8b1   :  { %2194 = vpow2.f32 %v1356_v62  ;;  %v1355_v0 = vsub.f32 %v1344_v58, %v1353_v63  ;;  %v78_v58 = vld [vmem:[#allocation6 + $0x98] sm:$0xff] }
 0x8b3   :  { %v1358_v1 = vmul.f32 1.442695, %v1355_v0 }
 0x8b4   :  { %v1373_v3 = vpop.permute.xlu1 %1372 }
 0x8b5   :  { %2196 = vpow2.f32 %v1358_v1  ;;  %2098 = vmatpush3.msra.mxu0 %v1373_v3 }
 0x8b6   :  { %2107 = vmatprep.subr.mxu0 %v70_v25 }
 0x8b8   :  { %v841_v10 = vpop.permute.xlu1 %840 }
 0x8b9   :  { %847 = vst.msk [vmem:[#allocation2] sm:$0xff] %vm846_vm3, %v841_v10 }
 0x8bc   :  { %v843_v4 = vpop.permute.xlu1 %842 }
 0x8bd   :  { %848 = vst.msk [vmem:[#allocation2 + $0x8] sm:$0xff] %vm846_vm3, %v843_v4  ;;  %v1946_v4 = vld [vmem:[#allocation8 + $0x4] ss:$0 sm:$0xff] }
 0x8be   :  { %v2195_v7 = vpop.eup %2194 }
 0x8bf   :  { %v1360_v8 = vsel %vm176_vm2, %v2195_v7, 0.0 }
 0x8c0   :  { %v1186_v9 = vpop.permute.xlu1 %1185  ;;  %1361 = vadd.xlane.f32.xlu0 %v1360_v8  ;;  %v1947_v8 = vld [vmem:[#allocation8 + $0x5] ss:$0 sm:$0xff] }
 0x8c1   :  { %1191 = vst.msk [vmem:[#allocation2 + $0x8] sm:$0xff] %vm1189_vm4, %v1186_v9 }
 0x8c2   :  { %v2197_v12 = vpop.eup %2196 }
 0x8c3   :  { %v1363_v13 = vsel %vm176_vm2, %v2197_v12, 0.0 }
 0x8c4   :  { %1364 = vadd.xlane.f32.xlu0 %v1363_v13 }
 0x8da   :  { %1448 = vrot.lane.b32.xlu0 %v2397_v11, %s2335_s13 }
 0x8de   :  { %1183 = vrot.lane.b32.xlu0 %v1101_v39, %s2336_s14 }
 0x949   :  { %v1362_v14 = vpop.xlane.xlu0 %1361 }
 0x94a   :  { %2198 = vrcp.f32 %v1362_v14 }
 0x94d   :  { %v1365_v15 = vpop.xlane.xlu0 %1364 }
 0x94e   :  { %2200 = vrcp.f32 %v1365_v15 }
 0x951   :  { %v1449_v16 = vpop.permute.xlu0 %1448 }
 0x952   :  { %2103 = vmatpush3.msra.mxu1 %v1449_v16 }
 0x953   :  { %2118 = vmatprep.subr.mxu1 %v66_v55 }
 0x955   :  { %v1184_v17 = vpop.permute.xlu0 %1183 }
 0x956   :  { %1190 = vst.msk [vmem:[#allocation2] sm:$0xff] %vm1189_vm4, %v1184_v17  ;;  %v74_v17 = vld [vmem:[#allocation6 + $0x78] sm:$0xff] }
 0x957   :  { %v2199_v18 = vpop.eup %2198 }
 0x958   :  { %v1367_v19 = vmul.f32 %v2199_v18, %v2195_v7  ;;  %v73_v18 = vld [vmem:[#allocation6 + $0x70] sm:$0xff] }
 0x95a   :  { %2100 = vmatmul.mubr.msk.f32.vlgmr.msra.gmra.mxu0 %vm176_vm2, %v1367_v19  ;;  %v1370_v20 = vadd.f32 %v1367_v19, %v2501_v45  ;;  %v72_v19 = vld [vmem:[#allocation6 + $0x68] sm:$0xff] }
 0x95b   :  { %v2201_v21 = vpop.eup %2200  ;;  %2108 = vmatpush3.msra.mxu0 %v70_v25 }
 0x95c   :  { %v1369_v22 = vmul.f32 %v2201_v21, %v2197_v12  ;;  %v1535_v23 = vmul.f32 0.25, %v1370_v20  ;;  %2109 = vmatprep.subr.mxu0 %v69_v26  ;;  %v71_v20 = vld [vmem:[#allocation6 + $0x60] sm:$0xff] }
 0x95d   :  { %2110 = vmatpush3.msra.mxu0 %v69_v26  ;;  %v1948_v21 = vld [vmem:[#allocation8 + $0x2] ss:$0 sm:$0xff] }
 0x95e   :  { %2105 = vmatmul.mubr.msk.f32.vlgmr.msra.gmra.mxu1 %vm176_vm2, %v1369_v22  ;;  %v1371_v11 = vadd.f32 %v1369_v22, %v2511_v37  ;;  %1537 = vst.msk [vmem:[#allocation10] sm:$0xff] %vm176_vm2, %v1535_v23  ;;  %2111 = vmatprep.subr.mxu0 %v68_v27 }
 0x95f   :  { %2112 = vmatpush3.msra.mxu0 %v68_v27  ;;  %2119 = vmatpush3.msra.mxu1 %v66_v55  ;;  %v1951_v27 = vld [vmem:[#allocation8 + $0x3] ss:$0 sm:$0xff] }
 0x960   :  { %v1536_v24 = vmul.f32 0.25, %v1371_v11  ;;  %2113 = vmatprep.subr.mxu0 %v67_v28 }
 0x961   :  { %2114 = vmatpush3.msra.mxu0 %v67_v28 }
 0x962   :  { %1538 = vst.msk [vmem:[#allocation10 + $0x8] sm:$0xff] %vm176_vm2, %v1536_v24  ;;  %2129 = vmatprep.subr.mxu0 %v78_v58 }
 0xa1a   :  { %v1444_v29 = vpop.f32.mrf.mxu0 }
 0xa1b   :  { %1526 = vrot.lane.b32.xlu0 %v1444_v29, %s2337_s15 }
 0xa1c   :  { %v2101_v30 = vpop.f32.mrf.mxu0 }
 0xa1e   :  { %v1520_v31 = vpop.f32.mrf.mxu1 }
 0xa1f   :  { %1528 = vrot.lane.b32.xlu1 %v1520_v31, %s2337_s15 }
 0xa20   :  { %v2106_v32 = vpop.f32.mrf.mxu1 }
 0xa8d   :  { %v1527_v33 = vpop.permute.xlu0 %1526 }
 0xa8e   :  { %1533 = vst.msk [vmem:[#allocation2] sm:$0xff] %vm1532_vm5, %v1527_v33 }
 0xa91   :  { %v1529_v34 = vpop.permute.xlu1 %1528 }
 0xa92   :  { %1534 = vst.msk [vmem:[#allocation2 + $0x8] sm:$0xff] %vm1532_vm5, %v1529_v34 }
 0xa95   :  { %v1539_v35 = vld [vmem:[#allocation2] sm:$0xff] }
 0xa96   :  { %2115 = vmatprep.mubr.msk.f32.mxu0 %vm91_vm0, %v1539_v35 }
 0xa99   :  { %v1540_v36 = vld [vmem:[#allocation2 + $0x8] sm:$0xff] }
 0xa9a   :  { %2116 = vmatmul.mubr.msk.f32.vlgmr.msra.gmra.mxu0 %vm91_vm0, %v1540_v36 }
 0xa9b   :  { %2130 = vmatpush3.msra.mxu0 %v78_v58 }
 0xa9c   :  { %2131 = vmatprep.subr.mxu0 %v77_v59 }
 0xa9d   :  { %2132 = vmatpush3.msra.mxu0 %v77_v59 }
 0xa9e   :  { %2133 = vmatprep.subr.mxu0 %v76_v60 }
 0xa9f   :  { %2134 = vmatpush3.msra.mxu0 %v76_v60 }
 0xaa0   :  { %2135 = vmatprep.subr.mxu0 %v75_v6 }
 0xaa1   :  { %2136 = vmatpush3.msra.mxu0 %v75_v6 }
 0xaa2   :  { %2137 = vmatprep.subr.mxu0 %v74_v17 }
 0xaa3   :  { %2138 = vmatpush3.msra.mxu0 %v74_v17 }
 0xaa4   :  { %2139 = vmatprep.subr.mxu0 %v73_v18 }
 0xaa5   :  { %2140 = vmatpush3.msra.mxu0 %v73_v18 }
 0xaa6   :  { %2141 = vmatprep.subr.mxu0 %v72_v19 }
 0xaa7   :  { %2142 = vmatpush3.msra.mxu0 %v72_v19 }
 0xaa8   :  { %2143 = vmatprep.subr.mxu0 %v71_v20 }
 0xaa9   :  { %2144 = vmatpush3.msra.mxu0 %v71_v20 }
 0xb5a   :  { %v2117_v40 = vpop.f32.mrf.mxu0 }
 0xb5b   :  { %v1623_v41 = vadd.f32 %v2117_v40, %v1943_v38 }
 0xb5c   :  { %v1617_v42 = vpop.f32.mrf.mxu0 }
 0xb5d   :  { %v1618_v43 = vadd.f32 %v1943_v38, %v1617_v42  ;;  %v1627_v44 = vadd.f32 %v1623_v41, %v2384_v5 }
 0xb5f   :  { %v1631_v45 = vsel %vm91_vm0, %v1627_v44, 0.0  ;;  %v1626_v46 = vadd.f32 %v1618_v43, %v2380_v2  ;;  %v65_v2 = vld [vmem:[#allocation6 + $0x30] sm:$0xff] }
 0xb60   :  { %1632 = vadd.xlane.f32.xlu1 %v1631_v45  ;;  %2120 = vmatprep.subr.mxu1 %v65_v2 }
 0xb61   :  { %v1628_v47 = vsel %vm91_vm0, %v1626_v46, 0.0  ;;  %2121 = vmatpush3.msra.mxu1 %v65_v2 }
 0xb62   :  { %1629 = vadd.xlane.f32.xlu0 %v1628_v47  ;;  %2122 = vmatprep.subr.mxu1 %v64_v56 }
 0xb63   :  { %2123 = vmatpush3.msra.mxu1 %v64_v56 }
 0xb64   :  { %2124 = vmatprep.subr.mxu1 %v63_v57 }
 0xb65   :  { %2125 = vmatpush3.msra.mxu1 %v63_v57 }
 0xbe9   :  { %v1633_v48 = vpop.xlane.xlu1 %1632 }
 0xbea   :  { %v1636_v49 = vmul.f32 0.03125, %v1633_v48 }
 0xbeb   :  { %v1630_v50 = vpop.xlane.xlu0 %1629 }
 0xbec   :  { %v1635_v37 = vmul.f32 0.03125, %v1630_v50  ;;  %v1638_v51 = vsub.f32 %v1627_v44, %v1636_v49 }
 0xbee   :  { %v1637_v39 = vsub.f32 %v1626_v46, %v1635_v37  ;;  %v1640_v54 = vmul.f32 %v1638_v51, %v1638_v51 }
 0xbf0   :  { %v1639_v52 = vmul.f32 %v1637_v39, %v1637_v39  ;;  %v1644_v5 = vsel %vm91_vm0, %v1640_v54, 0.0 }
 0xbf2   :  { %v1641_v53 = vsel %vm91_vm0, %v1639_v52, 0.0 }
 0xbf3   :  { %1642 = vadd.xlane.f32.xlu0 %v1641_v53 }
 0xbf7   :  { %1645 = vadd.xlane.f32.xlu0 %v1644_v5 }
 0xc7c   :  { %v1643_v61 = vpop.xlane.xlu0 %1642 }
 0xc7d   :  { %v1647_v62 = vmul.f32 0.03125, %v1643_v61 }
 0xc7f   :  { %v1649_v63 = vadd.f32 1e-05, %v1647_v62 }
 0xc80   :  { %v1646_v0 = vpop.xlane.xlu0 %1645 }
 0xc81   :  { %2202 = vrsqrt.f32 %v1649_v63  ;;  %v1648_v1 = vmul.f32 0.03125, %v1646_v0 }
 0xc83   :  { %v1650_v3 = vadd.f32 1e-05, %v1648_v1 }
 0xc85   :  { %2204 = vrsqrt.f32 %v1650_v3 }
 0xc8e   :  { %v2203_v10 = vpop.eup %2202 }
 0xc8f   :  { %v1653_v7 = vmul.f32 %v2203_v10, %v1637_v39 }
 0xc91   :  { %v1659_v9 = vmul.f32 %v1946_v4, %v1653_v7 }
 0xc92   :  { %v2205_v12 = vpop.eup %2204 }
 0xc93   :  { %v1654_v13 = vmul.f32 %v2205_v12, %v1638_v51  ;;  %v1665_v14 = vadd.f32 %v1947_v8, %v1659_v9 }
 0xc95   :  { %v1660_v15 = vmul.f32 %v1946_v4, %v1654_v13  ;;  %2126 = vmatprep.mubr.msk.f32.mxu1 %vm91_vm0, %v1665_v14 }
 0xc97   :  { %v1666_v16 = vadd.f32 %v1947_v8, %v1660_v15 }
 0xc99   :  { %2127 = vmatmul.mubr.msk.f32.vlgmr.msra.gmra.mxu1 %vm91_vm0, %v1666_v16 }
 0xd59   :  { %v2128_v22 = vpop.f32.mrf.mxu1 }
 0xd5a   :  { %v1749_v23 = vadd.f32 %v2128_v22, %v1948_v21 }
 0xd5b   :  { %v1743_v11 = vpop.f32.mrf.mxu1 }
 0xd5c   :  { %v1744_v24 = vadd.f32 %v1948_v21, %v1743_v11  ;;  %v1753_v26 = vmax.f32 %v1749_v23, 0.0 }
 0xd5e   :  { %v1752_v25 = vmax.f32 %v1744_v24, 0.0 }
 0xd60   :  { %2145 = vmatprep.mubr.msk.f32.mxu0 %vm1758_vm6, %v1752_v25 }
 0xd61   :  { %2146 = vmatmul.mubr.msk.f32.vlgmr.msra.gmra.mxu0 %vm1758_vm6, %v1753_v26 }
 0xe21   :  { %v2147_v28 = vpop.f32.mrf.mxu0 }
 0xe22   :  { %v1837_v29 = vadd.f32 %v2147_v28, %v1951_v27 }
 0xe23   :  { %v1831_v30 = vpop.f32.mrf.mxu0 }
 0xe24   :  { %v1832_v31 = vadd.f32 %v1951_v27, %v1831_v30  ;;  %v1841_v32 = vadd.f32 %v1837_v29, %v1666_v16 }
 0xe26   :  { %v1845_v33 = vsel %vm91_vm0, %v1841_v32, 0.0  ;;  %v1840_v34 = vadd.f32 %v1832_v31, %v1665_v14 }
 0xe27   :  { %1846 = vadd.xlane.f32.xlu0 %v1845_v33 }
 0xe28   :  { %v1842_v35 = vsel %vm91_vm0, %v1840_v34, 0.0 }
 0xe29   :  { %1843 = vadd.xlane.f32.xlu1 %v1842_v35 }
 0xeb0   :  { %v1847_v36 = vpop.xlane.xlu0 %1846 }
 0xeb1   :  { %v1849_v38 = vmul.f32 0.03125, %v1847_v36 }
 0xeb2   :  { %v1844_v40 = vpop.xlane.xlu1 %1843 }
 0xeb3   :  { %v1851_v41 = vsub.f32 %v1841_v32, %v1849_v38  ;;  %v1848_v42 = vmul.f32 0.03125, %v1844_v40 }
 0xeb5   :  { %v1850_v43 = vsub.f32 %v1840_v34, %v1848_v42  ;;  %v1853_v44 = vmul.f32 %v1851_v41, %v1851_v41 }
 0xeb7   :  { %v1857_v45 = vsel %vm91_vm0, %v1853_v44, 0.0  ;;  %v1852_v46 = vmul.f32 %v1850_v43, %v1850_v43 }
 0xeb8   :  { %1858 = vadd.xlane.f32.xlu0 %v1857_v45 }
 0xeb9   :  { %v1854_v47 = vsel %vm91_vm0, %v1852_v46, 0.0 }
 0xeba   :  { %1855 = vadd.xlane.f32.xlu1 %v1854_v47 }
 0xebb   :  { %2281 = shalt.err (!%p2278_p5)
}
 0xebc   :  { %1905 = dma.vmem_to_hbm [thread:$0]  %s1900_s17, 256, %s2572_s4, [#allocation11], %s2320_s20, %s2320_s20, %s2321_s21   ;;  %v1954_v53 = vld [vmem:[#allocation8 + $0x6] ss:$0 sm:$0xff]  ;;  %v1955_v55 = vld [vmem:[#allocation8 + $0x7] ss:$0 sm:$0xff] }
 0xebd   :  { %s2339_s23 = smov [#allocation9]  }
 0xebe   :  { %s1887_s24 = sshll.u32 %s2339_s23, 4  ;;  %s1888_s24 = int_to_ptr.vmem [resolvable:$true] %s1887_s24 }
 0xebf   :  { %s2290_s4 = scalar_lea.vmem %s1888_s24, 256  ;;  %p2295_p7 = scmp.lt.s32.totalorder %s1888_s24, %s1888_s24 }
 0xec0   :  { %p2291_p6 = scmp.ne.s32.totalorder %s1888_s24, %s2290_s4  ;;  %p2296_p8 = scmp.lt.s32.totalorder %s2290_s4, %s2290_s4 }
 0xec2   :  { %p2297_p9 = por %p2296_p8, %p2295_p7 }
 0xec4   :  { %p2298_p10 = pnand %p2297_p9, %p2291_p6 }
 0xf41   :  { %v1859_v48 = vpop.xlane.xlu0 %1858 }
 0xf42   :  { %v1861_v49 = vmul.f32 0.03125, %v1859_v48 }
 0xf43   :  { %v1856_v50 = vpop.xlane.xlu1 %1855 }
 0xf44   :  { %v1863_v37 = vadd.f32 1e-05, %v1861_v49  ;;  %v1860_v51 = vmul.f32 0.03125, %v1856_v50 }
 0xf46   :  { %2206 = vrsqrt.f32 %v1863_v37  ;;  %v1862_v39 = vadd.f32 1e-05, %v1860_v51 }
 0xf48   :  { %2208 = vrsqrt.f32 %v1862_v39 }
 0xf53   :  { %v2207_v52 = vpop.eup %2206 }
 0xf54   :  { %v1867_v54 = vmul.f32 %v2207_v52, %v1851_v41 }
 0xf55   :  { %v2209_v5 = vpop.eup %2208 }
 0xf56   :  { %v1866_v2 = vmul.f32 %v2209_v5, %v1850_v43  ;;  %v1873_v56 = vmul.f32 %v1954_v53, %v1867_v54 }
 0xf58   :  { %v1872_v57 = vmul.f32 %v1954_v53, %v1866_v2  ;;  %v1879_v58 = vadd.f32 %v1955_v55, %v1873_v56 }
 0xf5a   :  { %v1878_v59 = vadd.f32 %v1955_v55, %v1872_v57  ;;  %1881 = vst.msk [vmem:[#allocation9 + $0x8] sm:$0xff] %vm91_vm0, %v1879_v58 }
 0xf5c   :  { %1880 = vst.msk [vmem:[#allocation9] sm:$0xff] %vm91_vm0, %v1878_v59 }
 0xf5d   :  { %2301 = shalt.err (!%p2298_p10)
}
 0xf5e   :  { %1893 = dma.vmem_to_hbm [thread:$0]  %s1888_s24, 256, %s2571_s3, [#allocation5], %s2320_s20, %s2320_s20, %s2321_s21  }
 0xf5f   :  { %2314 = dma.done.wait [#allocation5], 256  }
 0xf60   :  { %2315 = vsyncadd [#allocation5], 4294967040 }
 0xf61   :  { %2316 = dma.done.wait [#allocation11], 256  }
 0xf62   :  { %2317 = vsyncadd [#allocation11], 4294967040 }
 0xf63   :  { %1912 = vsyncpa [#allocation4], 1 }
 0xf64   :  { %1913 = vsyncpa [#allocation7], 1 }
 0xf65   :  { %1914 = vsyncpa [#allocation5], 1 }
 0xf66   :  { %1915 = vsyncpa [#allocation11], 1 }

</bundles_post_ra>
